<compile_context>
chip_gen: v7x
topology: tpu7x:2x2x1
jax: 0.10.0
libtpu: 0.0.40
codegen_flags: <defaults>
</compile_context>

<pallas_src>
import math

import jax
import jax.numpy as jnp
from jax.experimental import pallas as pl
from jax.experimental.pallas import tpu as pltpu


_PAD_FILL = -1.0e7   # matches torch masked_fill_(-10000000.0)
_OFF_FILL = -2.0e7   # strictly lower fill for cross-batch (off-block) entries


def alignment_kernel(temp_ref, a_ref, b_ref, ta_ref, tb_ref, fa_ref, fb_ref):
    a = a_ref[0]            # (R, H)  packed rows = (batch-in-block, La)
    bm = b_ref[0]           # (C, H)  packed rows = (batch-in-block, Lb)
    ta = ta_ref[0]          # (R, 1)  f32, +-(local_batch_id+1); sign encodes mask_a
    tb = tb_ref[0]          # (1, C)  f32, +-(local_batch_id+1); sign encodes mask_b
    temp = temp_ref[0, 0]   # f32 scalar (learnable temperature, from SMEM)

    # scores[r, c] = <a_r, b_c> * temperature   (MXU, K = H)
    scores = jax.lax.dot_general(
        a, bm, (((1,), (1,)), ((), ())),
        preferred_element_type=jnp.float32) * temp

    # Block-diagonal + padding mask from the signed batch tags (VPU compares
    # on data already in vregs; no iota division, no mask matmul).
    same = jnp.abs(ta) == jnp.abs(tb)                 # same batch within the pack
    valid = jnp.logical_and(ta > 0.0, tb > 0.0)       # both positions unmasked
    attn = jnp.where(jnp.logical_and(same, valid), scores,
                     jnp.where(same, jnp.float32(_PAD_FILL),
                               jnp.float32(_OFF_FILL)))

    # Softmax over rows (original dim=1, i.e. over La) -> feature_b.
    # Off-block entries (-2e7) underflow to exactly 0, so fully-masked rows /
    # cols still normalize over La / Lb exactly like the per-batch reference.
    m0 = jnp.max(attn, axis=0, keepdims=True)          # (1, C)
    e0 = jnp.exp(attn - m0)
    p0 = e0 * (1.0 / jnp.sum(e0, axis=0, keepdims=True))
    fb = jax.lax.dot_general(                          # attn_a^T @ a -> (C, H)
        p0.astype(a.dtype), a, (((0,), (0,)), ((), ())),
        preferred_element_type=jnp.float32)
    fb_ref[0] = fb.astype(fb_ref.dtype)

    # Softmax over cols (original dim=2, i.e. over Lb) -> feature_a.
    m1 = jnp.max(attn, axis=1, keepdims=True)          # (R, 1)
    e1 = jnp.exp(attn - m1)
    p1 = e1 * (1.0 / jnp.sum(e1, axis=1, keepdims=True))
    fa = jax.lax.dot_general(                          # attn_b @ b -> (R, H)
        p1.astype(bm.dtype), bm, (((1,), (0,)), ((), ())),
        preferred_element_type=jnp.float32)
    fa_ref[0] = fa.astype(fa_ref.dtype)


def _vmem_budget_bytes():
    """(block-selection budget, vmem_limit cap), generation aware."""
    cap = 64 * 1024 * 1024
    try:
        cap = int(getattr(pltpu.get_tpu_info(), "vmem_capacity_bytes", cap))
    except Exception:
        pass
    if cap >= 96 * 1024 * 1024:                      # v5e / v6e: 128 MiB physical
        return 48 * 1024 * 1024, 100 * 1024 * 1024
    return 12 * 1024 * 1024, 48 * 1024 * 1024        # v7x-class: 64 MiB physical


def _choose_block_b(B, La, Lb, H, itemsize, budget):
    """Batches packed per grid step: target ~256-wide packed tiles, VMEM-capped."""
    target = max(1, 256 // max(La, Lb, 1))
    bt = min(max(B, 1), target)

    def fits(n):
        r, c = n * La, n * Lb
        io = 2 * (2 * (r + c) * H * itemsize + (r + c) * 4)   # a,b,fa,fb + tags (dbl-buf)
        interm = 6 * r * c * 4                                # live f32 (R,C) temporaries
        return io + interm <= budget

    while bt > 1 and not fits(bt):
        bt -= 1
    # Prefer >=2 grid steps (v7x megacore) only when both halves stay >=128-wide.
    if bt >= B and B > 1:
        half = (B + 1) // 2
        if half * max(La, Lb, 1) >= 128:
            bt = half
    return bt


def alignment_forward(a, b, mask_a, mask_b, temperature, *, block_b=None):
    """Pallas implementation of Alignment.forward."""
    B, La, H = a.shape
    _, Lb, _ = b.shape
    out_dtype = a.dtype
    itemsize = jnp.dtype(a.dtype).itemsize

    budget, vmem_cap = _vmem_budget_bytes()
    bt = block_b if block_b is not None else _choose_block_b(B, La, Lb, H, itemsize, budget)
    bt = max(1, min(int(bt), B))

    b_total = -(-B // bt) * bt            # pad B up to a multiple of bt
    grid_b = b_total // bt
    R, C = bt * La, bt * Lb

    if b_total != B:
        pad = b_total - B
        a = jnp.concatenate([a, jnp.zeros((pad, La, H), a.dtype)], axis=0)
        b = jnp.concatenate([b, jnp.zeros((pad, Lb, H), b.dtype)], axis=0)
        mask_a = jnp.concatenate([mask_a, jnp.zeros((pad, La, 1), mask_a.dtype)], axis=0)
        mask_b = jnp.concatenate([mask_b, jnp.zeros((pad, Lb, 1), mask_b.dtype)], axis=0)

    # Pack Bt batches into the matmul M/N dims (free reshapes: leading dims only).
    a3 = a.reshape(grid_b, R, H)
    b3 = b.reshape(grid_b, C, H)

    # Signed batch tags: +-(local_batch_id + 1), sign = padding mask.
    ids_a = jnp.repeat(jnp.arange(1, bt + 1, dtype=jnp.float32), La)   # (R,)
    ids_b = jnp.repeat(jnp.arange(1, bt + 1, dtype=jnp.float32), Lb)   # (C,)
    ma = mask_a.astype(jnp.float32).reshape(grid_b, R)
    mb = mask_b.astype(jnp.float32).reshape(grid_b, C)
    tag_a = jnp.where(ma != 0.0, ids_a, -ids_a).reshape(grid_b, R, 1)
    tag_b = jnp.where(mb != 0.0, ids_b, -ids_b).reshape(grid_b, 1, C)

    temp = jnp.asarray(temperature, dtype=jnp.float32).reshape(1, 1)

    # VMEM limit derived from the chosen block, capped per chip generation.
    est = (2 * (2 * (R + C) * H * itemsize + (R + C) * 4) + 6 * R * C * 4)
    vmem_limit = int(min(max(2 * est, 32 * 1024 * 1024), vmem_cap))

    cost = pl.CostEstimate(
        flops=int(6 * grid_b * R * C * H),
        transcendentals=int(2 * grid_b * R * C),
        bytes_accessed=int(2 * grid_b * (R + C) * H * itemsize
                           + 4 * grid_b * (R + C) + 4),
    )

    fa3, fb3 = pl.pallas_call(
        alignment_kernel,
        out_shape=(
            jax.ShapeDtypeStruct((grid_b, R, H), out_dtype),
            jax.ShapeDtypeStruct((grid_b, C, H), out_dtype),
        ),
        grid=(grid_b,),
        in_specs=[
            pl.BlockSpec(memory_space=pltpu.MemorySpace.SMEM),        # temperature
            pl.BlockSpec((1, R, H), lambda i: (i, 0, 0)),             # a (packed)
            pl.BlockSpec((1, C, H), lambda i: (i, 0, 0)),             # b (packed)
            pl.BlockSpec((1, R, 1), lambda i: (i, 0, 0)),             # tag_a
            pl.BlockSpec((1, 1, C), lambda i: (i, 0, 0)),             # tag_b
        ],
        out_specs=(
            pl.BlockSpec((1, R, H), lambda i: (i, 0, 0)),             # feature_a
            pl.BlockSpec((1, C, H), lambda i: (i, 0, 0)),             # feature_b
        ),
        compiler_params=pltpu.CompilerParams(
            dimension_semantics=("parallel",),
            vmem_limit_bytes=vmem_limit,
        ),
        cost_estimate=cost,
    )(temp, a3, b3, tag_a, tag_b)

    fa = fa3.reshape(b_total, La, H)[:B]
    fb = fb3.reshape(b_total, Lb, H)[:B]
    return fa, fb


def _reference(a, b, mask_a, mask_b, temperature):
    # precision="highest": true-f32 reference, independent of XLA's default
    # (bf16-operand-truncated) f32 matmul policy on the MXU.
    attn = jnp.einsum("bld,bmd->blm", a, b, precision="highest") * temperature
    mask = mask_a.astype(jnp.float32) * jnp.swapaxes(mask_b.astype(jnp.float32), 1, 2)
    attn = jnp.where(mask == 0, -1.0e7, attn)
    attn_a = jax.nn.softmax(attn, axis=1)
    attn_b = jax.nn.softmax(attn, axis=2)
    feature_b = jnp.einsum("blm,bld->bmd", attn_a, a, precision="highest")
    feature_a = jnp.einsum("blm,bmd->bld", attn_b, b, precision="highest")
    return feature_a, feature_b


if __name__ == "__main__":
    # Small shapes consistent with the module: batch=2, seq_a=seq_b=8, hidden=32.
    B, La, Lb, H = 2, 8, 8, 32

    key = jax.random.PRNGKey(0)
    ka, kb = jax.random.split(key)
    # Round inputs to bf16-representable values so the score matmul agrees
    # regardless of whether a given path truncates f32 operands to bf16.
    a = jax.random.normal(ka, (B, La, H), dtype=jnp.float32)
    a = a.astype(jnp.bfloat16).astype(jnp.float32)
    b = jax.random.normal(kb, (B, Lb, H), dtype=jnp.float32)
    b = b.astype(jnp.bfloat16).astype(jnp.float32)

    # 0/1 padding masks with some padded positions.
    mask_a = jnp.ones((B, La, 1), dtype=jnp.float32).at[0, La - 2:, 0].set(0.0)
    mask_b = jnp.ones((B, Lb, 1), dtype=jnp.float32).at[1, Lb - 3:, 0].set(0.0)

    # nn.Parameter(torch.tensor(1 / math.sqrt(hidden_size))) — deterministic init.
    temperature = 1.0 / math.sqrt(H)

    fa, fb = alignment_forward(a, b, mask_a, mask_b, temperature)
    jax.block_until_ready((fa, fb))

    fa_ref, fb_ref = _reference(a, b, mask_a, mask_b, temperature)
    # Tolerance covers residual differences between the in-kernel MXU matmul
    # path and the XLA reference's f32 dot policy; expected error is ~1e-6.
    assert fa.shape == (B, La, H) and fb.shape == (B, Lb, H)
    assert jnp.allclose(fa, fa_ref, atol=5e-3, rtol=5e-3), "feature_a mismatch"
    assert jnp.allclose(fb, fb_ref, atol=5e-3, rtol=5e-3), "feature_b mismatch"

    print("KERNEL_OK")
</pallas_src>

<mosaic_0001>
module attributes {stable_mosaic.version = 11 : i64} {
  func.func @alignment_kernel(%arg0: i32, %arg1: memref<1x1xf32, #tpu.memory_space<smem>>, %arg2: memref<1x16x32xf32, #tpu.memory_space<vmem>>, %arg3: memref<1x16x32xf32, #tpu.memory_space<vmem>>, %arg4: memref<1x16x1xf32, #tpu.memory_space<vmem>>, %arg5: memref<1x1x16xf32, #tpu.memory_space<vmem>>, %arg6: memref<1x16x32xf32, #tpu.memory_space<vmem>>, %arg7: memref<1x16x32xf32, #tpu.memory_space<vmem>>) attributes {dimension_semantics = [#tpu.dimension_semantics<parallel>], iteration_bounds = array<i64: 1>, scalar_prefetch = 0 : i64, scratch_operands = 0 : i64, tpu.core_type = #tpu.core_type<tc>, window_params = [{transform_indices = @transform_0, window_bounds = array<i64: 1, 1>}, {transform_indices = @transform_1, window_bounds = array<i64: 1, 16, 32>}, {transform_indices = @transform_2, window_bounds = array<i64: 1, 16, 32>}, {transform_indices = @transform_3, window_bounds = array<i64: 1, 16, 1>}, {transform_indices = @transform_4, window_bounds = array<i64: 1, 1, 16>}, {transform_indices = @transform_5, window_bounds = array<i64: 1, 16, 32>}, {transform_indices = @transform_6, window_bounds = array<i64: 1, 16, 32>}]} {
    %c0 = arith.constant 0 : index
    %c0_0 = arith.constant 0 : index
    %c0_1 = arith.constant 0 : index
    %0 = vector.load %arg2[%c0, %c0_0, %c0_1] : memref<1x16x32xf32, #tpu.memory_space<vmem>>, vector<1x16x32xf32>
    %1 = vector.shape_cast %0 : vector<1x16x32xf32> to vector<16x32xf32>
    %c0_2 = arith.constant 0 : index
    %c0_3 = arith.constant 0 : index
    %c0_4 = arith.constant 0 : index
    %2 = vector.load %arg3[%c0_2, %c0_3, %c0_4] : memref<1x16x32xf32, #tpu.memory_space<vmem>>, vector<1x16x32xf32>
    %3 = vector.shape_cast %2 : vector<1x16x32xf32> to vector<16x32xf32>
    %c0_5 = arith.constant 0 : index
    %c0_6 = arith.constant 0 : index
    %c0_7 = arith.constant 0 : index
    %4 = vector.load %arg4[%c0_5, %c0_6, %c0_7] : memref<1x16x1xf32, #tpu.memory_space<vmem>>, vector<1x16x1xf32>
    %5 = vector.shape_cast %4 : vector<1x16x1xf32> to vector<16x1xf32>
    %c0_8 = arith.constant 0 : index
    %c0_9 = arith.constant 0 : index
    %c0_10 = arith.constant 0 : index
    %6 = vector.load %arg5[%c0_8, %c0_9, %c0_10] : memref<1x1x16xf32, #tpu.memory_space<vmem>>, vector<1x1x16xf32>
    %7 = vector.shape_cast %6 : vector<1x1x16xf32> to vector<1x16xf32>
    %c0_11 = arith.constant 0 : index
    %c0_12 = arith.constant 0 : index
    %8 = memref.load %arg1[%c0_11, %c0_12] : memref<1x1xf32, #tpu.memory_space<smem>>
    %cst = arith.constant dense<0.000000e+00> : vector<16x16xf32>
    %9 = tpu.matmul %1, %3, %cst {dimension_numbers = #tpu.dot_dimension_numbers<[1], [1], [0], [0], [0, 0, 1, 0], [], []>} : vector<16x32xf32>, vector<16x32xf32>, vector<16x16xf32> -> vector<16x16xf32>
    %10 = vector.broadcast %8 : f32 to vector<16x16xf32>
    %11 = arith.mulf %9, %10 : vector<16x16xf32>
    %12 = math.absf %5 : vector<16x1xf32>
    %13 = math.absf %7 : vector<1x16xf32>
    %14 = vector.broadcast %12 : vector<16x1xf32> to vector<16x16xf32>
    %15 = vector.broadcast %13 : vector<1x16xf32> to vector<16x16xf32>
    %16 = arith.cmpf oeq, %14, %15 : vector<16x16xf32>
    %cst_13 = arith.constant 0.000000e+00 : f32
    %17 = vector.broadcast %cst_13 : f32 to vector<16x1xf32>
    %18 = arith.cmpf ogt, %5, %17 : vector<16x1xf32>
    %cst_14 = arith.constant 0.000000e+00 : f32
    %19 = vector.broadcast %cst_14 : f32 to vector<1x16xf32>
    %20 = arith.cmpf ogt, %7, %19 : vector<1x16xf32>
    %21 = vector.broadcast %18 : vector<16x1xi1> to vector<16x16xi1>
    %22 = vector.broadcast %20 : vector<1x16xi1> to vector<16x16xi1>
    %23 = arith.andi %21, %22 : vector<16x16xi1>
    %24 = arith.andi %16, %23 : vector<16x16xi1>
    %cst_15 = arith.constant -1.000000e+07 : f32
    %cst_16 = arith.constant -2.000000e+07 : f32
    %25 = vector.broadcast %cst_15 : f32 to vector<16x16xf32>
    %26 = vector.broadcast %cst_16 : f32 to vector<16x16xf32>
    %27 = arith.select %16, %25, %26 : vector<16x16xi1>, vector<16x16xf32>
    %28 = arith.select %24, %11, %27 : vector<16x16xi1>, vector<16x16xf32>
    %cst_17 = arith.constant dense<0xFF800000> : vector<16xf32>
    %29 = vector.multi_reduction <maximumf>, %28, %cst_17 [0] : vector<16x16xf32> to vector<16xf32>
    %30 = vector.shape_cast %29 : vector<16xf32> to vector<1x16xf32>
    %31 = vector.broadcast %30 : vector<1x16xf32> to vector<16x16xf32>
    %32 = arith.subf %28, %31 : vector<16x16xf32>
    %33 = math.exp %32 : vector<16x16xf32>
    %cst_18 = arith.constant dense<0.000000e+00> : vector<16xf32>
    %34 = vector.multi_reduction <add>, %33, %cst_18 [0] : vector<16x16xf32> to vector<16xf32>
    %35 = vector.shape_cast %34 : vector<16xf32> to vector<1x16xf32>
    %cst_19 = arith.constant 1.000000e+00 : f32
    %36 = vector.broadcast %cst_19 : f32 to vector<1x16xf32>
    %37 = arith.divf %36, %35 : vector<1x16xf32>
    %38 = vector.broadcast %37 : vector<1x16xf32> to vector<16x16xf32>
    %39 = arith.mulf %33, %38 : vector<16x16xf32>
    %cst_20 = arith.constant dense<0.000000e+00> : vector<16x32xf32>
    %40 = tpu.matmul %39, %1, %cst_20 {dimension_numbers = #tpu.dot_dimension_numbers<[0], [0], [1], [1], [0, 1, 1, 1], [], []>} : vector<16x16xf32>, vector<16x32xf32>, vector<16x32xf32> -> vector<16x32xf32>
    %c0_21 = arith.constant 0 : index
    %c0_22 = arith.constant 0 : index
    %c0_23 = arith.constant 0 : index
    %41 = vector.load %arg7[%c0_21, %c0_22, %c0_23] : memref<1x16x32xf32, #tpu.memory_space<vmem>>, vector<1x16x32xf32>
    %42 = vector.shape_cast %41 : vector<1x16x32xf32> to vector<16x32xf32>
    %43 = vector.shape_cast %40 : vector<16x32xf32> to vector<1x16x32xf32>
    tpu.vector_store %arg7[%c0_21, %c0_22, %c0_23], %43 {strides = array<i32>} : memref<1x16x32xf32, #tpu.memory_space<vmem>>, vector<1x16x32xf32>,
    %cst_24 = arith.constant dense<0xFF800000> : vector<16xf32>
    %44 = vector.multi_reduction <maximumf>, %28, %cst_24 [1] : vector<16x16xf32> to vector<16xf32>
    %45 = vector.shape_cast %44 : vector<16xf32> to vector<16x1xf32>
    %46 = vector.broadcast %45 : vector<16x1xf32> to vector<16x16xf32>
    %47 = arith.subf %28, %46 : vector<16x16xf32>
    %48 = math.exp %47 : vector<16x16xf32>
    %cst_25 = arith.constant dense<0.000000e+00> : vector<16xf32>
    %49 = vector.multi_reduction <add>, %48, %cst_25 [1] : vector<16x16xf32> to vector<16xf32>
    %50 = vector.shape_cast %49 : vector<16xf32> to vector<16x1xf32>
    %cst_26 = arith.constant 1.000000e+00 : f32
    %51 = vector.broadcast %cst_26 : f32 to vector<16x1xf32>
    %52 = arith.divf %51, %50 : vector<16x1xf32>
    %53 = vector.broadcast %52 : vector<16x1xf32> to vector<16x16xf32>
    %54 = arith.mulf %48, %53 : vector<16x16xf32>
    %cst_27 = arith.constant dense<0.000000e+00> : vector<16x32xf32>
    %55 = tpu.matmul %54, %3, %cst_27 {dimension_numbers = #tpu.dot_dimension_numbers<[1], [0], [0], [1], [0, 0, 1, 1], [], []>} : vector<16x16xf32>, vector<16x32xf32>, vector<16x32xf32> -> vector<16x32xf32>
    %c0_28 = arith.constant 0 : index
    %c0_29 = arith.constant 0 : index
    %c0_30 = arith.constant 0 : index
    %56 = vector.load %arg6[%c0_28, %c0_29, %c0_30] : memref<1x16x32xf32, #tpu.memory_space<vmem>>, vector<1x16x32xf32>
    %57 = vector.shape_cast %56 : vector<1x16x32xf32> to vector<16x32xf32>
    %58 = vector.shape_cast %55 : vector<16x32xf32> to vector<1x16x32xf32>
    tpu.vector_store %arg6[%c0_28, %c0_29, %c0_30], %58 {strides = array<i32>} : memref<1x16x32xf32, #tpu.memory_space<vmem>>, vector<1x16x32xf32>,
    return
  }
  func.func @transform_0(%arg0: i32) -> (i32, i32) {
    %c0_i32 = arith.constant 0 : i32
    %c0_i32_0 = arith.constant 0 : i32
    %c0_i32_1 = arith.constant 0 : i32
    return %c0_i32, %c0_i32_0 : i32, i32
  }
  func.func @transform_1(%arg0: i32) -> (i32, i32, i32) {
    %c0_i32 = arith.constant 0 : i32
    %c0_i32_0 = arith.constant 0 : i32
    %c0_i32_1 = arith.constant 0 : i32
    return %arg0, %c0_i32, %c0_i32_0 : i32, i32, i32
  }
  func.func @transform_2(%arg0: i32) -> (i32, i32, i32) {
    %c0_i32 = arith.constant 0 : i32
    %c0_i32_0 = arith.constant 0 : i32
    %c0_i32_1 = arith.constant 0 : i32
    return %arg0, %c0_i32, %c0_i32_0 : i32, i32, i32
  }
  func.func @transform_3(%arg0: i32) -> (i32, i32, i32) {
    %c0_i32 = arith.constant 0 : i32
    %c0_i32_0 = arith.constant 0 : i32
    %c0_i32_1 = arith.constant 0 : i32
    return %arg0, %c0_i32, %c0_i32_0 : i32, i32, i32
  }
  func.func @transform_4(%arg0: i32) -> (i32, i32, i32) {
    %c0_i32 = arith.constant 0 : i32
    %c0_i32_0 = arith.constant 0 : i32
    %c0_i32_1 = arith.constant 0 : i32
    return %arg0, %c0_i32, %c0_i32_0 : i32, i32, i32
  }
  func.func @transform_5(%arg0: i32) -> (i32, i32, i32) {
    %c0_i32 = arith.constant 0 : i32
    %c0_i32_0 = arith.constant 0 : i32
    %c0_i32_1 = arith.constant 0 : i32
    return %arg0, %c0_i32, %c0_i32_0 : i32, i32, i32
  }
  func.func @transform_6(%arg0: i32) -> (i32, i32, i32) {
    %c0_i32 = arith.constant 0 : i32
    %c0_i32_0 = arith.constant 0 : i32
    %c0_i32_1 = arith.constant 0 : i32
    return %arg0, %c0_i32, %c0_i32_0 : i32, i32, i32
  }
}

</mosaic_0001>

<bundles_post_ra>
// kernel: tpu_custom_call.1
= control target key start
LH: loop header
LB: loop body
LE: loop exit
PB: predicated region body
PF: predicated region fallthrough
CT: control target
= control target key end

     0   :  { %13 = vsyncpa [#allocation4], 0  ;;  %s756_s0 = inlined_call_operand.<no memory space> [shape: f32[1,1], index: 0, kind: input, shape index: {}]   ;;  %s757_s1 = inlined_call_operand.vmem [shape: f32[1,16,32], index: 1, kind: input, shape index: {}]   ;;  %s758_s2 = inlined_call_operand.hbm [shape: f32[1,16,32], index: 2, kind: input, shape index: {}]   ;;  %s759_s3 = inlined_call_operand.vmem [shape: f32[1,16,1], index: 3, kind: input, shape index: {}]   ;;  %s760_s4 = inlined_call_operand.vmem [shape: f32[1,1,16], index: 4, kind: input, shape index: {}]   ;;  %s761_s5 = inlined_call_operand.hbm [shape: f32[1,16,32], index: 5, kind: output, shape index: {0}]   ;;  %s762_s6 = inlined_call_operand.hbm [shape: f32[1,16,32], index: 6, kind: output, shape index: {1}]  }
   0x1   :  { %14 = vsyncpa [#allocation5], 0 }
   0x2   :  { %15 = vsyncpa [#allocation8], 0  ;;  %s619_s21 = smov [#allocation3]   ;;  %s547_s25 = scalar_lea.hbm %s758_s2, 256 }
   0x3   :  { %s25_s22 = sshll.u32 %s619_s21, 4  ;;  %p548_p0 = scmp.ne.s32.totalorder %s758_s2, %s547_s25  ;;  %s26_s22 = int_to_ptr.vmem [resolvable:$true] %s25_s22 }
   0x4   :  { %p551_p1 = scmp.lt.u32.totalorder %s547_s25, %s758_s2 }
   0x6   :  { %p553_p2 = pnand %p551_p1, %p548_p0 }
   0x8   :  { %556 = shalt.err (!%p553_p2)
}
   0x9   :  { %s557_s30 = scalar_lea.vmem %s26_s22, 256  ;;  %p562_p4 = scmp.lt.s32.totalorder %s26_s22, %s26_s22 }
   0xa   :  { %p558_p3 = scmp.ne.s32.totalorder %s26_s22, %s557_s30  ;;  %p563_p5 = scmp.lt.s32.totalorder %s557_s30, %s557_s30 }
   0xc   :  { %p564_p6 = por %p563_p5, %p562_p4 }
   0xe   :  { %p565_p7 = pnand %p564_p6, %p558_p3 }
  0x10   :  { %568 = shalt.err (!%p565_p7)
}
  0x11   :  { %s620_s7 = smov 128   ;;  %s621_s8 = smov 8  }
  0x12   :  { %31 = dma.hbm_to_vmem [thread:$0]  %s758_s2, 256, %s26_s22, [#allocation4], %s620_s7, %s620_s7, %s621_s8  }
  0x13   :  { %613 = dma.done.wait [#allocation4], 256  }
  0x14   :  { %614 = vsyncadd [#allocation4], 4294967040  ;;  %v622_v0 = vmov 0   ;;  %vm47_vm0 = vcmask 261120   ;;  %v41_v1 = vld [vmem:[#allocation3] sm:$0xff]  ;;  %v42_v2 = vld [vmem:[#allocation3 + $0x8] sm:$0xff]  ;;  %v152_v12 = vlaneseq  ;;  %v135_v24 = vstv %s756_s0 }
  0x15   :  { %531 = vset.pattern.permute.xlu0 %v622_v0  ;;  %532 = vset.pattern.permute.xlu1 %v622_v0  ;;  %vm510_vm1 = vmpackc.low %vm47_vm0, %vm47_vm0  ;;  %v681_v3 = vld [vmem:[%s757_s1] sm:$0xff]  ;;  %v683_v4 = vpack.c.bf16 %v42_v2, %v41_v1  ;;  %v44_v6 = vld [vmem:[%s759_s3 + $0x8] sm:$0xff]  ;;  %v623_v25 = vmov -20000000.0   ;;  %vm186_vm13 = vcmask 130048   ;;  %s624_s0 = smov [#allocation7]  }
  0x16   :  { %492 = vmatprep.mubr.msk.f32.mxu0 %vm47_vm0, %v681_v3  ;;  %v43_v5 = vld [vmem:[%s759_s3] sm:$0xff]  ;;  %vm160_vm3 = vcmp.gt.f32.partialorder %v44_v6, 0.0  ;;  %v139_v10 = vand.u32 2147483647, %v44_v6  ;;  %v698_v11 = vld [vmem:[%s757_s1 + $0x8] sm:$0xff]  ;;  %v153_v14 = vshrl.u32 %v152_v12, 7 }
  0x17   :  { %vm159_vm2 = vcmp.gt.f32.partialorder %v43_v5, 0.0  ;;  %511 = vmatprep.subr.msk.bf16.mxu0 %vm510_vm1, %v683_v4  ;;  %v163_v8 = vsel %vm160_vm3, 1, %v622_v0  ;;  %v138_v9 = vand.u32 2147483647, %v43_v5  ;;  %v45_v13 = vld [vmem:[%s760_s4] sm:$0x1] }
  0x18   :  { %v162_v7 = vsel %vm159_vm2, 1, %v622_v0  ;;  %514 = vmatpush3.bf16.xpose.msk.msra.mxu0 %vm510_vm1, %v683_v4  ;;  %168 = vperm.xlu1 %532, %v163_v8   ;;  %vm161_vm4 = vcmp.gt.f32.partialorder %v45_v13, 0.0  ;;  %v154_v15 = vsub.s32 0, %v153_v14  ;;  %v140_v19 = vand.u32 2147483647, %v45_v13  ;;  %s452_s4 = sshll.u32 %s624_s0, 4  ;;  %s453_s4 = int_to_ptr.vmem [resolvable:$true] %s452_s4 }
  0x19   :  { %165 = vperm.xlu0 %531, %v162_v7   ;;  %v172_v17 = vsel %vm161_vm4, 1, %v622_v0  ;;  %s569_s20 = scalar_lea.vmem %s453_s4, 256  ;;  %p574_p9 = scmp.lt.s32.totalorder %s453_s4, %s453_s4 }
  0x1a   :  { %v176_v20 = vrot.slane %v172_v17, %v154_v15  ;;  %v155_v22 = vrot.slane %v140_v19, %v154_v15  ;;  %p570_p8 = scmp.ne.s32.totalorder %s453_s4, %s569_s20  ;;  %p575_p10 = scmp.lt.s32.totalorder %s569_s20, %s569_s20 }
  0x1c   :  { %148 = vperm.xlu1 %532, %v139_v10   ;;  %vm177_vm6 = vcmp.eq.s32.totalorder %v176_v20, 1  ;;  %p576_p11 = por %p575_p10, %p574_p9 }
  0x1d   :  { %143 = vperm.xlu0 %531, %v138_v9   ;;  %v515_v9 = vpack.c.bf16 %v698_v11, %v681_v3 }
  0x1e   :  { %p577_p12 = pnand %p576_p11, %p570_p8 }
  0x1f   :  { %493 = vmatmul.mubr.msk.f32.vlgmr.msra.gmra.mrb[0].mxu0 %vm47_vm0, %v698_v11  ;;  %516 = vmatprep.subr.bf16.mxu1 %v515_v9 }
  0x20   :  { %518 = vmatpush3.bf16.msra.mxu1 %v515_v9 }
  0x21   :  { %520 = vmatprep.subr.bf16.mxu1 %v683_v4 }
  0x97   :  { %v169_v16 = vpop.permute.xlu1 %168 }
  0x98   :  { %v166_v18 = vpop.permute.xlu0 %165  ;;  %vm171_vm5 = vcmp.eq.s32.totalorder %v169_v16, 1 }
  0x99   :  { %vm170_vm7 = vcmp.eq.s32.totalorder %v166_v18, 1  ;;  %vm179_vm8 = vmand %vm171_vm5, %vm177_vm6 }
  0x9a   :  { %vm178_vm10 = vmand %vm170_vm7, %vm177_vm6 }
  0x9b   :  { %v149_v21 = vpop.permute.xlu1 %148 }
  0x9c   :  { %v144_v23 = vpop.permute.xlu0 %143  ;;  %vm158_vm9 = vcmp.eq.f32.partialorder %v149_v21, %v155_v22 }
  0x9d   :  { %vm157_vm11 = vcmp.eq.f32.partialorder %v144_v23, %v155_v22  ;;  %vm181_vm12 = vmand %vm158_vm9, %vm179_vm8  ;;  %v183_v26 = vsel %vm158_vm9, -10000000.0, %v623_v25 }
  0x9e   :  { %vm180_vm14 = vmand %vm157_vm11, %vm178_vm10  ;;  %v182_v31 = vsel %vm157_vm11, -10000000.0, %v623_v25 }
  0xf2   :  { %v494_v27 = vpop.f32.mrb[0].mxu0 }
  0xf3   :  { %v137_v28 = vmul.f32 %v494_v27, %v135_v24  ;;  %v126_v29 = vpop.f32.mrb[1].mxu0 }
  0xf4   :  { %v136_v30 = vmul.f32 %v135_v24, %v126_v29 }
  0xf5   :  { %v185_v32 = vsel %vm181_vm12, %v137_v28, %v183_v26 }
  0xf6   :  { %v188_v33 = vsel %vm186_vm13, %v185_v32, -inf  ;;  %v184_v34 = vsel %vm180_vm14, %v136_v30, %v182_v31 }
  0xf7   :  { %332 = vmax.xlane.f32.xlu1 %v188_v33  ;;  %v187_v35 = vsel %vm186_vm13, %v184_v34, -inf }
  0xf8   :  { %330 = vmax.xlane.f32.xlu0 %v187_v35  ;;  %v189_v36 = vmax.f32 %v187_v35, %v188_v33 }
  0xfa   :  { %v190_v37 = vrot.slane %v189_v36, 4 }
  0xfc   :  { %v191_v38 = vmax.f32 %v189_v36, %v190_v37 }
  0xfe   :  { %v192_v39 = vrot.slane %v191_v38, 2 }
 0x100   :  { %v193_v40 = vmax.f32 %v191_v38, %v192_v39 }
 0x102   :  { %v194_v41 = vrot.slane %v193_v40, 1 }
 0x104   :  { %v195_v42 = vmax.f32 %v193_v40, %v194_v41 }
 0x106   :  { %v196_v43 = vsub.f32 %v184_v34, %v195_v42  ;;  %v197_v44 = vsub.f32 %v185_v32, %v195_v42 }
 0x108   :  { %v198_v45 = vmul.f32 1.442695, %v196_v43  ;;  %v200_v46 = vmul.f32 1.442695, %v197_v44 }
 0x10a   :  { %533 = vpow2.f32 %v198_v45 }
 0x10b   :  { %535 = vpow2.f32 %v200_v46 }
 0x114   :  { %v534_v47 = vpop.eup %533 }
 0x115   :  { %v536_v48 = vpop.eup %535  ;;  %v202_v49 = vsel %vm186_vm13, %v534_v47, 0.0 }
 0x116   :  { %v203_v50 = vsel %vm186_vm13, %v536_v48, 0.0 }
 0x117   :  { %v204_v51 = vadd.f32 %v203_v50, %v202_v49 }
 0x119   :  { %v205_v52 = vrot.slane %v204_v51, 4 }
 0x11b   :  { %v206_v53 = vadd.f32 %v205_v52, %v204_v51 }
 0x11d   :  { %v207_v54 = vrot.slane %v206_v53, 2 }
 0x11f   :  { %v208_v55 = vadd.f32 %v207_v54, %v206_v53 }
 0x121   :  { %v209_v56 = vrot.slane %v208_v55, 1 }
 0x123   :  { %v210_v57 = vadd.f32 %v209_v56, %v208_v55 }
 0x125   :  { %537 = vrcp.f32 %v210_v57 }
 0x12f   :  { %v538_v58 = vpop.eup %537 }
 0x130   :  { %v213_v59 = vmul.f32 %v538_v58, %v534_v47  ;;  %v214_v60 = vmul.f32 %v538_v58, %v536_v48 }
 0x132   :  { %215 = vxpose.xlu1.b32.start [1/2] (short) (narrow) %v213_v59, 16 }
 0x136   :  { %216 = vxpose.xlu1.b32.end [2/2] (short) (narrow) %v214_v60, 16 }
 0x184   :  { %v333_v61 = vpop.xlane.xlu1 %332 }
 0x185   :  { %v335_v62 = vsub.f32 %v185_v32, %v333_v61  ;;  %v331_v63 = vpop.xlane.xlu0 %330 }
 0x186   :  { %v334_v0 = vsub.f32 %v184_v34, %v331_v63 }
 0x187   :  { %v338_v1 = vmul.f32 1.442695, %v335_v62 }
 0x188   :  { %v336_v2 = vmul.f32 1.442695, %v334_v0 }
 0x18a   :  { %539 = vpow2.f32 %v336_v2 }
 0x18b   :  { %541 = vpow2.f32 %v338_v1 }
 0x194   :  { %v540_v5 = vpop.eup %539 }
 0x195   :  { %v340_v6 = vsel %vm186_vm13, %v540_v5, 0.0  ;;  %v542_v7 = vpop.eup %541 }
 0x196   :  { %341 = vadd.xlane.f32.xlu0 %v340_v6  ;;  %v343_v8 = vsel %vm186_vm13, %v542_v7, 0.0 }
 0x19a   :  { %344 = vadd.xlane.f32.xlu0 %v343_v8 }
 0x1b2   :  { %v231_v10 = vpop.trf.xlu1 }
 0x1b3   :  { %499 = vmatprep.mubr.msk.f32.mxu1 %vm186_vm13, %v231_v10 }
 0x1b6   :  { %v232_v12 = vpop.trf.xlu1 }
 0x1b7   :  { %500 = vmatmul.mubr.msk.f32.vlgmr.msra.gmra.mrb[0].mxu1 %vm186_vm13, %v232_v12 }
 0x1b8   :  { %522 = vmatpush3.bf16.msra.mxu1 %v683_v4 }
 0x223   :  { %v342_v13 = vpop.xlane.xlu0 %341 }
 0x224   :  { %543 = vrcp.f32 %v342_v13 }
 0x227   :  { %v345_v14 = vpop.xlane.xlu0 %344 }
 0x228   :  { %545 = vrcp.f32 %v345_v14 }
 0x22e   :  { %v544_v15 = vpop.eup %543 }
 0x22f   :  { %v350_v16 = vmul.f32 %v544_v15, %v540_v5 }
 0x231   :  { %506 = vmatprep.mubr.msk.f32.mxu1 %vm186_vm13, %v350_v16 }
 0x232   :  { %v546_v3 = vpop.eup %545 }
 0x233   :  { %v351_v11 = vmul.f32 %v546_v3, %v542_v7 }
 0x235   :  { %507 = vmatmul.mubr.msk.f32.vlgmr.msra.gmra.mrb[2].mxu1 %vm186_vm13, %v351_v11 }
 0x28a   :  { %v501_v17 = vpop.f32.mrb[0].mxu1 }
 0x28b   :  { %329 = vst.msk [vmem:[#allocation7 + $0x8] sm:$0xff] %vm47_vm0, %v501_v17  ;;  %v319_v18 = vpop.f32.mrb[1].mxu1 }
 0x28c   :  { %328 = vst.msk [vmem:[#allocation7] sm:$0xff] %vm47_vm0, %v319_v18 }
 0x28d   :  { %580 = shalt.err (!%p577_p12)
}
 0x28e   :  { %s581_s23 = scalar_lea.hbm %s762_s6, 256 }
 0x28f   :  { %p582_p13 = scmp.ne.s32.totalorder %s762_s6, %s581_s23  ;;  %p585_p0 = scmp.lt.u32.totalorder %s581_s23, %s762_s6 }
 0x291   :  { %p587_p1 = pnand %p585_p0, %p582_p13 }
 0x293   :  { %590 = shalt.err (!%p587_p1)
}
 0x294   :  { %458 = dma.vmem_to_hbm [thread:$0]  %s453_s4, 256, %s762_s6, [#allocation8], %s620_s7, %s620_s7, %s621_s8  }
 0x295   :  { %s625_s30 = smov [#allocation6]  }
 0x296   :  { %s440_s9 = sshll.u32 %s625_s30, 4  ;;  %s441_s9 = int_to_ptr.vmem [resolvable:$true] %s440_s9 }
 0x297   :  { %s591_s10 = scalar_lea.vmem %s441_s9, 256  ;;  %p596_p3 = scmp.lt.s32.totalorder %s441_s9, %s441_s9 }
 0x298   :  { %p592_p2 = scmp.ne.s32.totalorder %s441_s9, %s591_s10  ;;  %p597_p4 = scmp.lt.s32.totalorder %s591_s10, %s591_s10 }
 0x29a   :  { %p598_p5 = por %p597_p4, %p596_p3 }
 0x29c   :  { %p599_p6 = pnand %p598_p5, %p592_p2 }
 0x308   :  { %v508_v4 = vpop.f32.mrb[2].mxu1 }
 0x309   :  { %434 = vst.msk [vmem:[#allocation6 + $0x8] sm:$0xff] %vm47_vm0, %v508_v4  ;;  %v424_v19 = vpop.f32.mrb[3].mxu1 }
 0x30a   :  { %433 = vst.msk [vmem:[#allocation6] sm:$0xff] %vm47_vm0, %v424_v19 }
 0x30b   :  { %602 = shalt.err (!%p599_p6)
}
 0x30c   :  { %s603_s6 = scalar_lea.hbm %s761_s5, 256 }
 0x30d   :  { %p604_p7 = scmp.ne.s32.totalorder %s761_s5, %s603_s6  ;;  %p607_p8 = scmp.lt.u32.totalorder %s603_s6, %s761_s5 }
 0x30f   :  { %p609_p9 = pnand %p607_p8, %p604_p7 }
 0x311   :  { %612 = shalt.err (!%p609_p9)
}
 0x312   :  { %446 = dma.vmem_to_hbm [thread:$0]  %s441_s9, 256, %s761_s5, [#allocation5], %s620_s7, %s620_s7, %s621_s8  }
 0x313   :  { %615 = dma.done.wait [#allocation5], 256  }
 0x314   :  { %616 = vsyncadd [#allocation5], 4294967040 }
 0x315   :  { %617 = dma.done.wait [#allocation8], 256  }
 0x316   :  { %618 = vsyncadd [#allocation8], 4294967040 }
 0x317   :  { %465 = vsyncpa [#allocation4], 1 }
 0x318   :  { %466 = vsyncpa [#allocation5], 1 }
 0x319   :  { %467 = vsyncpa [#allocation8], 1 }

</bundles_post_ra>
